<compile_context>
chip_gen: v5e
topology: v5e:2x2
jax: 0.10.0
libtpu: 0.0.40
codegen_flags: <defaults>
</compile_context>

<pallas_src>
import numpy as np
import jax
import jax.numpy as jnp
from jax.experimental import pallas as pl
from jax.experimental.pallas import tpu as pltpu

GAMMA = 1.0  # attn_gamma


def sed_attn_head_kernel(x_ref, ssum_ref, tpos_ref,
                         wf_ref, bf_ref, wg_ref, bg_ref,
                         wv_ref, bv_ref, wc_ref, bc_ref, out_ref):
    x = x_ref[0]                         # (BT, C): rows = Bb*T (time-major), cols = channels
    ssum = ssum_ref[...]                 # (Bb, BT) 0/1 per-segment row-sum matrix
    Bb, BT = ssum.shape
    T = BT // Bb
    f32 = jnp.float32

    # ---- max_pool1d(3,1,1) + avg_pool1d(3,1,1) over each length-T segment (rows) ----
    tpos = tpos_ref[...]                 # (BT, 1) int32: position within the segment
    is_first = tpos == 0
    is_last = tpos == (T - 1)
    x_prev = pltpu.roll(x, shift=1, axis=0)        # row j <- row j-1 (wrap; wrapped rows masked)
    x_next = pltpu.roll(x, shift=BT - 1, axis=0)   # row j <- row j+1 (non-negative shift)
    neg_inf = f32(-jnp.inf)
    x1 = jnp.maximum(jnp.maximum(jnp.where(is_first, neg_inf, x_prev), x),
                     jnp.where(is_last, neg_inf, x_next))
    # F.avg_pool1d default count_include_pad=True -> always divide by 3
    x2 = (jnp.where(is_first, 0.0, x_prev) + x
          + jnp.where(is_last, 0.0, x_next)) * (1.0 / 3.0)
    xp = x1 + x2                         # (BT, C)

    # ---- SelfAttention (1x1 convs == channel matmuls), with the sum over T folded through ----
    zf = jnp.dot(xp, wf_ref[...], preferred_element_type=f32) + bf_ref[...]   # (BT, M)
    e = jnp.exp(jnp.tanh(zf))            # tanh in [-1,1] -> exp is safe without max-subtraction
    zg = jnp.dot(xp, wg_ref[...], preferred_element_type=f32) + bg_ref[...]   # (BT, M)
    g = jax.nn.sigmoid(zg)

    seg_e = jnp.dot(ssum, e, preferred_element_type=f32)        # (Bb, M)  sum_t exp(tanh)
    seg_eg = jnp.dot(ssum, e * g, preferred_element_type=f32)   # (Bb, M)  sum_t exp*sigmoid
    # sum_t aij = sum_t softmax_t(tanh)*sigmoid = seg_eg / seg_e (softmax denom constant over t)
    sT_aij = seg_eg * pl.reciprocal(seg_e, approx=True)         # (Bb, M)

    sT_xp = jnp.dot(ssum, xp, preferred_element_type=f32)       # (Bb, C)  sum_t xp

    # sum_t y = sum_t xp + gamma * (sum_t aij @ Wv^T + T*bv)
    sT_y = sT_xp + GAMMA * (jnp.dot(sT_aij, wv_ref[...], preferred_element_type=f32)
                            + f32(T) * bv_ref[...])             # (Bb, C)

    # sum_t logits = (sum_t y) @ Wc^T + T*bc   -> lane-dense (Bb, NC) store
    out_ref[0] = (jnp.dot(sT_y, wc_ref[...], preferred_element_type=f32)
                  + f32(T) * bc_ref[...])                       # (Bb, NC)


def sed_attn_head(feats, params, *, block_rows=128):
    """feats: (B, C, H, W) backbone feature map (NCHW).  Returns (B, num_classes)."""
    B, C, H, W = feats.shape
    wf, bf, wg, bg, wv, bv, wc, bc = params
    M, NC = wf.shape[0], wc.shape[0]
    T = W                                # torch.mean(x, dim=2) reduces H; sequence axis is W
    f32 = jnp.float32

    # mean over H in the wrapper (fuses with the producer; kernel DMA shrinks by H x)
    x = jnp.mean(feats.astype(f32), axis=2)                  # (B, C, T)

    # pack Bb batch elements per grid step -> (Bb*T, C) time-major tile per step
    Bb = max(1, min(B, block_rows // T)) if T < block_rows else 1
    G = pl.cdiv(B, Bb)
    B_pad = G * Bb
    if B_pad != B:
        x = jnp.pad(x, ((0, B_pad - B), (0, 0), (0, 0)))      # zero-pad batches, sliced off below
    xs = x.transpose(0, 2, 1).reshape(G, Bb * T, C)           # (G, Bb*T, C)
    BT = Bb * T

    # segment bookkeeping built once outside the kernel
    seg = jnp.arange(BT, dtype=jnp.int32) // T
    ssum = (jnp.arange(Bb, dtype=jnp.int32)[:, None] == seg[None, :]).astype(f32)   # (Bb, BT)
    tpos = (jnp.arange(BT, dtype=jnp.int32) % T)[:, None]                           # (BT, 1)

    # weights/biases pre-laid-out for time-major matmuls
    wfT, wgT = wf.T.astype(f32), wg.T.astype(f32)             # (C, M)
    wvT = wv.T.astype(f32)                                    # (M, C)
    wcT = wc.T.astype(f32)                                    # (C, NC)
    bf_r, bg_r = bf.reshape(1, M).astype(f32), bg.reshape(1, M).astype(f32)
    bv_r, bc_r = bv.reshape(1, C).astype(f32), bc.reshape(1, NC).astype(f32)

    def full_spec(a):
        nd = a.ndim
        return pl.BlockSpec(a.shape, lambda g, _nd=nd: (0,) * _nd)

    out = pl.pallas_call(
        sed_attn_head_kernel,
        out_shape=jax.ShapeDtypeStruct((G, Bb, NC), f32),
        grid=(G,),
        in_specs=[pl.BlockSpec((1, BT, C), lambda g: (g, 0, 0)),
                  full_spec(ssum), full_spec(tpos),
                  full_spec(wfT), full_spec(bf_r),
                  full_spec(wgT), full_spec(bg_r),
                  full_spec(wvT), full_spec(bv_r),
                  full_spec(wcT), full_spec(bc_r)],
        out_specs=pl.BlockSpec((1, Bb, NC), lambda g: (g, 0, 0)),
        compiler_params=pltpu.CompilerParams(dimension_semantics=("parallel",)),
    )(xs, ssum, tpos, wfT, bf_r, wgT, bg_r, wvT, bv_r, wcT, bc_r)

    return out.reshape(B_pad, NC)[:B]


def reference(feats, params):
    """Pure-JAX reference mirroring the PyTorch forward (eval mode)."""
    wf, bf, wg, bg, wv, bv, wc, bc = params
    x = jnp.mean(feats, axis=2)                                   # (B, C, W): torch.mean(dim=2)
    pn = jnp.pad(x, ((0, 0), (0, 0), (1, 1)), constant_values=-jnp.inf)
    x1 = jnp.maximum(jnp.maximum(pn[..., :-2], pn[..., 1:-1]), pn[..., 2:])
    p0 = jnp.pad(x, ((0, 0), (0, 0), (1, 1)))
    x2 = (p0[..., :-2] + p0[..., 1:-1] + p0[..., 2:]) / 3.0
    xp = x1 + x2
    zf = jnp.einsum('mc,bct->bmt', wf, xp) + bf[None, :, None]
    fi = jax.nn.softmax(jnp.tanh(zf), axis=-1)
    gi = jax.nn.sigmoid(jnp.einsum('mc,bct->bmt', wg, xp) + bg[None, :, None])
    oi = jnp.einsum('cm,bmt->bct', wv, fi * gi) + bv[None, :, None]
    y = xp + GAMMA * oi
    logits = jnp.einsum('nc,bct->bnt', wc, y) + bc[None, :, None]
    return jnp.sum(logits, axis=2)


if __name__ == "__main__":
    key = jax.random.PRNGKey(0)
    # small shapes: B=2, num_features C=32, feature map 16x16 (T=W=16),
    # attn_channels M=64, num_classes NC=16
    B, C, H, W = 2, 32, 16, 16
    M, NC = 64, 16
    ks = jax.random.split(key, 9)

    feats = jax.random.normal(ks[0], (B, C, H, W), jnp.float32)

    def init(k, shape, fan_in):
        bound = 1.0 / np.sqrt(fan_in)
        return jax.random.uniform(k, shape, jnp.float32, -bound, bound)

    wf = init(ks[1], (M, C), C);  bf = init(ks[2], (M,), C)      # attn.fx (Conv1d k=1)
    wg = init(ks[3], (M, C), C);  bg = init(ks[4], (M,), C)      # attn.gx
    wv = init(ks[5], (C, M), M);  bv = init(ks[6], (C,), M)      # attn.vx
    wc = init(ks[7], (NC, C), C); bc = init(ks[8], (NC,), C)     # clf (Linear)
    params = (wf, bf, wg, bg, wv, bv, wc, bc)

    out = jax.block_until_ready(sed_attn_head(feats, params))
    assert out.shape == (B, NC)
    ref = reference(feats, params)
    # tolerance slightly looser than before: approx EUP reciprocal in the softmax
    # denominator + fp reordering from folding the T-sum through the linear layers.
    np.testing.assert_allclose(np.asarray(out), np.asarray(ref), rtol=2e-3, atol=2e-3)
    print("KERNEL_OK")
</pallas_src>

<mosaic_0001>
module attributes {stable_mosaic.version = 11 : i64} {
  func.func @sed_attn_head_kernel(%arg0: i32, %arg1: memref<1x32x32xf32, #tpu.memory_space<vmem>>, %arg2: memref<2x32xf32, #tpu.memory_space<vmem>>, %arg3: memref<32x1xi32, #tpu.memory_space<vmem>>, %arg4: memref<32x64xf32, #tpu.memory_space<vmem>>, %arg5: memref<1x64xf32, #tpu.memory_space<vmem>>, %arg6: memref<32x64xf32, #tpu.memory_space<vmem>>, %arg7: memref<1x64xf32, #tpu.memory_space<vmem>>, %arg8: memref<64x32xf32, #tpu.memory_space<vmem>>, %arg9: memref<1x32xf32, #tpu.memory_space<vmem>>, %arg10: memref<32x16xf32, #tpu.memory_space<vmem>>, %arg11: memref<1x16xf32, #tpu.memory_space<vmem>>, %arg12: memref<1x2x16xf32, #tpu.memory_space<vmem>>) attributes {dimension_semantics = [#tpu.dimension_semantics<parallel>], iteration_bounds = array<i64: 1>, scalar_prefetch = 0 : i64, scratch_operands = 0 : i64, tpu.core_type = #tpu.core_type<tc>, window_params = [{transform_indices = @transform_0, window_bounds = array<i64: 1, 32, 32>}, {pipeline_mode = #tpu.pipeline_mode<synchronous>, transform_indices = @transform_1, window_bounds = array<i64: 2, 32>}, {pipeline_mode = #tpu.pipeline_mode<synchronous>, transform_indices = @transform_2, window_bounds = array<i64: 32, 1>}, {pipeline_mode = #tpu.pipeline_mode<synchronous>, transform_indices = @transform_3, window_bounds = array<i64: 32, 64>}, {pipeline_mode = #tpu.pipeline_mode<synchronous>, transform_indices = @transform_4, window_bounds = array<i64: 1, 64>}, {pipeline_mode = #tpu.pipeline_mode<synchronous>, transform_indices = @transform_5, window_bounds = array<i64: 32, 64>}, {pipeline_mode = #tpu.pipeline_mode<synchronous>, transform_indices = @transform_6, window_bounds = array<i64: 1, 64>}, {pipeline_mode = #tpu.pipeline_mode<synchronous>, transform_indices = @transform_7, window_bounds = array<i64: 64, 32>}, {pipeline_mode = #tpu.pipeline_mode<synchronous>, transform_indices = @transform_8, window_bounds = array<i64: 1, 32>}, {pipeline_mode = #tpu.pipeline_mode<synchronous>, transform_indices = @transform_9, window_bounds = array<i64: 32, 16>}, {pipeline_mode = #tpu.pipeline_mode<synchronous>, transform_indices = @transform_10, window_bounds = array<i64: 1, 16>}, {transform_indices = @transform_11, window_bounds = array<i64: 1, 2, 16>}]} {
    %c0 = arith.constant 0 : index
    %c0_0 = arith.constant 0 : index
    %c0_1 = arith.constant 0 : index
    %0 = vector.load %arg1[%c0, %c0_0, %c0_1] : memref<1x32x32xf32, #tpu.memory_space<vmem>>, vector<1x32x32xf32>
    %1 = vector.shape_cast %0 : vector<1x32x32xf32> to vector<32x32xf32>
    %c0_2 = arith.constant 0 : index
    %c0_3 = arith.constant 0 : index
    %2 = vector.load %arg2[%c0_2, %c0_3] : memref<2x32xf32, #tpu.memory_space<vmem>>, vector<2x32xf32>
    %c0_4 = arith.constant 0 : index
    %c0_5 = arith.constant 0 : index
    %3 = vector.load %arg3[%c0_4, %c0_5] : memref<32x1xi32, #tpu.memory_space<vmem>>, vector<32x1xi32>
    %c0_i32 = arith.constant 0 : i32
    %4 = vector.broadcast %c0_i32 : i32 to vector<32x1xi32>
    %5 = arith.cmpi eq, %3, %4 : vector<32x1xi32>
    %c15_i32 = arith.constant 15 : i32
    %6 = vector.broadcast %c15_i32 : i32 to vector<32x1xi32>
    %7 = arith.cmpi eq, %3, %6 : vector<32x1xi32>
    %c1_i32 = arith.constant 1 : i32
    %8 = tpu.dynamic_rotate %1 by %c1_i32 dim 0 : vector<32x32xf32>, i32 -> vector<32x32xf32>
    %c31_i32 = arith.constant 31 : i32
    %9 = tpu.dynamic_rotate %1 by %c31_i32 dim 0 : vector<32x32xf32>, i32 -> vector<32x32xf32>
    %cst = arith.constant 0xFF800000 : f32
    %10 = vector.shape_cast %5 : vector<32x1xi1> to vector<32x1xi1>
    %11 = vector.broadcast %10 : vector<32x1xi1> to vector<32x32xi1>
    %12 = vector.broadcast %cst : f32 to vector<32x32xf32>
    %13 = arith.select %11, %12, %8 : vector<32x32xi1>, vector<32x32xf32>
    %14 = arith.maximumf %13, %1 : vector<32x32xf32>
    %cst_6 = arith.constant 0xFF800000 : f32
    %15 = vector.shape_cast %7 : vector<32x1xi1> to vector<32x1xi1>
    %16 = vector.broadcast %15 : vector<32x1xi1> to vector<32x32xi1>
    %17 = vector.broadcast %cst_6 : f32 to vector<32x32xf32>
    %18 = arith.select %16, %17, %9 : vector<32x32xi1>, vector<32x32xf32>
    %19 = arith.maximumf %14, %18 : vector<32x32xf32>
    %cst_7 = arith.constant 0.000000e+00 : f32
    %20 = vector.shape_cast %5 : vector<32x1xi1> to vector<32x1xi1>
    %21 = vector.broadcast %20 : vector<32x1xi1> to vector<32x32xi1>
    %22 = vector.broadcast %cst_7 : f32 to vector<32x32xf32>
    %23 = arith.select %21, %22, %8 : vector<32x32xi1>, vector<32x32xf32>
    %24 = arith.addf %23, %1 : vector<32x32xf32>
    %cst_8 = arith.constant 0.000000e+00 : f32
    %25 = vector.shape_cast %7 : vector<32x1xi1> to vector<32x1xi1>
    %26 = vector.broadcast %25 : vector<32x1xi1> to vector<32x32xi1>
    %27 = vector.broadcast %cst_8 : f32 to vector<32x32xf32>
    %28 = arith.select %26, %27, %9 : vector<32x32xi1>, vector<32x32xf32>
    %29 = arith.addf %24, %28 : vector<32x32xf32>
    %cst_9 = arith.constant 0.333333343 : f32
    %30 = vector.broadcast %cst_9 : f32 to vector<32x32xf32>
    %31 = arith.mulf %29, %30 : vector<32x32xf32>
    %32 = arith.addf %19, %31 : vector<32x32xf32>
    %c0_10 = arith.constant 0 : index
    %c0_11 = arith.constant 0 : index
    %33 = vector.load %arg4[%c0_10, %c0_11] : memref<32x64xf32, #tpu.memory_space<vmem>>, vector<32x64xf32>
    %cst_12 = arith.constant dense<0.000000e+00> : vector<32x64xf32>
    %34 = tpu.matmul %32, %33, %cst_12 {dimension_numbers = #tpu.dot_dimension_numbers<[1], [0], [0], [1], [0, 0, 1, 1], [], []>} : vector<32x32xf32>, vector<32x64xf32>, vector<32x64xf32> -> vector<32x64xf32>
    %c0_13 = arith.constant 0 : index
    %c0_14 = arith.constant 0 : index
    %35 = vector.load %arg5[%c0_13, %c0_14] : memref<1x64xf32, #tpu.memory_space<vmem>>, vector<1x64xf32>
    %36 = vector.broadcast %35 : vector<1x64xf32> to vector<32x64xf32>
    %37 = arith.addf %34, %36 : vector<32x64xf32>
    %38 = math.tanh %37 : vector<32x64xf32>
    %39 = math.exp %38 : vector<32x64xf32>
    %c0_15 = arith.constant 0 : index
    %c0_16 = arith.constant 0 : index
    %40 = vector.load %arg6[%c0_15, %c0_16] : memref<32x64xf32, #tpu.memory_space<vmem>>, vector<32x64xf32>
    %cst_17 = arith.constant dense<0.000000e+00> : vector<32x64xf32>
    %41 = tpu.matmul %32, %40, %cst_17 {dimension_numbers = #tpu.dot_dimension_numbers<[1], [0], [0], [1], [0, 0, 1, 1], [], []>} : vector<32x32xf32>, vector<32x64xf32>, vector<32x64xf32> -> vector<32x64xf32>
    %c0_18 = arith.constant 0 : index
    %c0_19 = arith.constant 0 : index
    %42 = vector.load %arg7[%c0_18, %c0_19] : memref<1x64xf32, #tpu.memory_space<vmem>>, vector<1x64xf32>
    %43 = vector.broadcast %42 : vector<1x64xf32> to vector<32x64xf32>
    %44 = arith.addf %41, %43 : vector<32x64xf32>
    %45 = arith.negf %44 : vector<32x64xf32>
    %46 = math.exp %45 : vector<32x64xf32>
    %cst_20 = arith.constant 1.000000e+00 : f32
    %47 = vector.broadcast %cst_20 : f32 to vector<32x64xf32>
    %48 = arith.addf %47, %46 : vector<32x64xf32>
    %49 = arith.divf %47, %48 : vector<32x64xf32>
    %cst_21 = arith.constant dense<0.000000e+00> : vector<2x64xf32>
    %50 = tpu.matmul %2, %39, %cst_21 {dimension_numbers = #tpu.dot_dimension_numbers<[1], [0], [0], [1], [0, 0, 1, 1], [], []>} : vector<2x32xf32>, vector<32x64xf32>, vector<2x64xf32> -> vector<2x64xf32>
    %51 = arith.mulf %39, %49 : vector<32x64xf32>
    %cst_22 = arith.constant dense<0.000000e+00> : vector<2x64xf32>
    %52 = tpu.matmul %2, %51, %cst_22 {dimension_numbers = #tpu.dot_dimension_numbers<[1], [0], [0], [1], [0, 0, 1, 1], [], []>} : vector<2x32xf32>, vector<32x64xf32>, vector<2x64xf32> -> vector<2x64xf32>
    %53 = tpu.reciprocal %50 {approx = true} : vector<2x64xf32> -> vector<2x64xf32>
    %54 = arith.mulf %52, %53 : vector<2x64xf32>
    %cst_23 = arith.constant dense<0.000000e+00> : vector<2x32xf32>
    %55 = tpu.matmul %2, %32, %cst_23 {dimension_numbers = #tpu.dot_dimension_numbers<[1], [0], [0], [1], [0, 0, 1, 1], [], []>} : vector<2x32xf32>, vector<32x32xf32>, vector<2x32xf32> -> vector<2x32xf32>
    %c0_24 = arith.constant 0 : index
    %c0_25 = arith.constant 0 : index
    %56 = vector.load %arg8[%c0_24, %c0_25] : memref<64x32xf32, #tpu.memory_space<vmem>>, vector<64x32xf32>
    %cst_26 = arith.constant dense<0.000000e+00> : vector<2x32xf32>
    %57 = tpu.matmul %54, %56, %cst_26 {dimension_numbers = #tpu.dot_dimension_numbers<[1], [0], [0], [1], [0, 0, 1, 1], [], []>} : vector<2x64xf32>, vector<64x32xf32>, vector<2x32xf32> -> vector<2x32xf32>
    %c0_27 = arith.constant 0 : index
    %c0_28 = arith.constant 0 : index
    %58 = vector.load %arg9[%c0_27, %c0_28] : memref<1x32xf32, #tpu.memory_space<vmem>>, vector<1x32xf32>
    %cst_29 = arith.constant 1.600000e+01 : f32
    %59 = vector.broadcast %cst_29 : f32 to vector<1x32xf32>
    %60 = arith.mulf %59, %58 : vector<1x32xf32>
    %61 = vector.broadcast %60 : vector<1x32xf32> to vector<2x32xf32>
    %62 = arith.addf %57, %61 : vector<2x32xf32>
    %cst_30 = arith.constant 1.000000e+00 : f32
    %63 = vector.broadcast %cst_30 : f32 to vector<2x32xf32>
    %64 = arith.mulf %63, %62 : vector<2x32xf32>
    %65 = arith.addf %55, %64 : vector<2x32xf32>
    %c0_31 = arith.constant 0 : index
    %c0_32 = arith.constant 0 : index
    %66 = vector.load %arg10[%c0_31, %c0_32] : memref<32x16xf32, #tpu.memory_space<vmem>>, vector<32x16xf32>
    %cst_33 = arith.constant dense<0.000000e+00> : vector<2x16xf32>
    %67 = tpu.matmul %65, %66, %cst_33 {dimension_numbers = #tpu.dot_dimension_numbers<[1], [0], [0], [1], [0, 0, 1, 1], [], []>} : vector<2x32xf32>, vector<32x16xf32>, vector<2x16xf32> -> vector<2x16xf32>
    %c0_34 = arith.constant 0 : index
    %c0_35 = arith.constant 0 : index
    %68 = vector.load %arg11[%c0_34, %c0_35] : memref<1x16xf32, #tpu.memory_space<vmem>>, vector<1x16xf32>
    %cst_36 = arith.constant 1.600000e+01 : f32
    %69 = vector.broadcast %cst_36 : f32 to vector<1x16xf32>
    %70 = arith.mulf %69, %68 : vector<1x16xf32>
    %71 = vector.broadcast %70 : vector<1x16xf32> to vector<2x16xf32>
    %72 = arith.addf %67, %71 : vector<2x16xf32>
    %c0_37 = arith.constant 0 : index
    %c0_38 = arith.constant 0 : index
    %c0_39 = arith.constant 0 : index
    %73 = vector.load %arg12[%c0_37, %c0_38, %c0_39] : memref<1x2x16xf32, #tpu.memory_space<vmem>>, vector<1x2x16xf32>
    %74 = vector.shape_cast %73 : vector<1x2x16xf32> to vector<2x16xf32>
    %75 = vector.shape_cast %72 : vector<2x16xf32> to vector<1x2x16xf32>
    tpu.vector_store %arg12[%c0_37, %c0_38, %c0_39], %75 {strides = array<i32>} : memref<1x2x16xf32, #tpu.memory_space<vmem>>, vector<1x2x16xf32>,
    return
  }
  func.func @transform_0(%arg0: i32) -> (i32, i32, i32) {
    %c0_i32 = arith.constant 0 : i32
    %c0_i32_0 = arith.constant 0 : i32
    %c0_i32_1 = arith.constant 0 : i32
    return %arg0, %c0_i32, %c0_i32_0 : i32, i32, i32
  }
  func.func @transform_1(%arg0: i32) -> (i32, i32) {
    %c0_i32 = arith.constant 0 : i32
    %c0_i32_0 = arith.constant 0 : i32
    %c0_i32_1 = arith.constant 0 : i32
    return %c0_i32, %c0_i32_0 : i32, i32
  }
  func.func @transform_2(%arg0: i32) -> (i32, i32) {
    %c0_i32 = arith.constant 0 : i32
    %c0_i32_0 = arith.constant 0 : i32
    %c0_i32_1 = arith.constant 0 : i32
    return %c0_i32, %c0_i32_0 : i32, i32
  }
  func.func @transform_3(%arg0: i32) -> (i32, i32) {
    %c0_i32 = arith.constant 0 : i32
    %c0_i32_0 = arith.constant 0 : i32
    %c0_i32_1 = arith.constant 0 : i32
    return %c0_i32, %c0_i32_0 : i32, i32
  }
  func.func @transform_4(%arg0: i32) -> (i32, i32) {
    %c0_i32 = arith.constant 0 : i32
    %c0_i32_0 = arith.constant 0 : i32
    %c0_i32_1 = arith.constant 0 : i32
    return %c0_i32, %c0_i32_0 : i32, i32
  }
  func.func @transform_5(%arg0: i32) -> (i32, i32) {
    %c0_i32 = arith.constant 0 : i32
    %c0_i32_0 = arith.constant 0 : i32
    %c0_i32_1 = arith.constant 0 : i32
    return %c0_i32, %c0_i32_0 : i32, i32
  }
  func.func @transform_6(%arg0: i32) -> (i32, i32) {
    %c0_i32 = arith.constant 0 : i32
    %c0_i32_0 = arith.constant 0 : i32
    %c0_i32_1 = arith.constant 0 : i32
    return %c0_i32, %c0_i32_0 : i32, i32
  }
  func.func @transform_7(%arg0: i32) -> (i32, i32) {
    %c0_i32 = arith.constant 0 : i32
    %c0_i32_0 = arith.constant 0 : i32
    %c0_i32_1 = arith.constant 0 : i32
    return %c0_i32, %c0_i32_0 : i32, i32
  }
  func.func @transform_8(%arg0: i32) -> (i32, i32) {
    %c0_i32 = arith.constant 0 : i32
    %c0_i32_0 = arith.constant 0 : i32
    %c0_i32_1 = arith.constant 0 : i32
    return %c0_i32, %c0_i32_0 : i32, i32
  }
  func.func @transform_9(%arg0: i32) -> (i32, i32) {
    %c0_i32 = arith.constant 0 : i32
    %c0_i32_0 = arith.constant 0 : i32
    %c0_i32_1 = arith.constant 0 : i32
    return %c0_i32, %c0_i32_0 : i32, i32
  }
  func.func @transform_10(%arg0: i32) -> (i32, i32) {
    %c0_i32 = arith.constant 0 : i32
    %c0_i32_0 = arith.constant 0 : i32
    %c0_i32_1 = arith.constant 0 : i32
    return %c0_i32, %c0_i32_0 : i32, i32
  }
  func.func @transform_11(%arg0: i32) -> (i32, i32, i32) {
    %c0_i32 = arith.constant 0 : i32
    %c0_i32_0 = arith.constant 0 : i32
    %c0_i32_1 = arith.constant 0 : i32
    return %arg0, %c0_i32, %c0_i32_0 : i32, i32, i32
  }
}

</mosaic_0001>

<bundles_post_ra>
// kernel: tpu_custom_call.1
= control target key start
LH: loop header
LB: loop body
LE: loop exit
PB: predicated region body
PF: predicated region fallthrough
CT: control target
= control target key end

     0   :  { %v571_v2 = vmov 0   ;;  %s871_s0 = inlined_call_operand.vmem [shape: f32[1,32,32], index: 0, kind: input, shape index: {}]   ;;  %s872_s1 = inlined_call_operand.vmem [shape: f32[2,32], index: 1, kind: input, shape index: {}]   ;;  %s873_s2 = inlined_call_operand.vmem [shape: s32[32,1], index: 2, kind: input, shape index: {}]   ;;  %s874_s3 = inlined_call_operand.vmem [shape: f32[32,64], index: 3, kind: input, shape index: {}]   ;;  %s875_s4 = inlined_call_operand.vmem [shape: f32[1,64], index: 4, kind: input, shape index: {}]   ;;  %s876_s5 = inlined_call_operand.vmem [shape: f32[32,64], index: 5, kind: input, shape index: {}]   ;;  %s877_s6 = inlined_call_operand.vmem [shape: f32[1,64], index: 6, kind: input, shape index: {}]   ;;  %s878_s7 = inlined_call_operand.vmem [shape: f32[64,32], index: 7, kind: input, shape index: {}]   ;;  %s879_s8 = inlined_call_operand.vmem [shape: f32[1,32], index: 8, kind: input, shape index: {}]   ;;  %s880_s9 = inlined_call_operand.vmem [shape: f32[32,16], index: 9, kind: input, shape index: {}]   ;;  %s881_s10 = inlined_call_operand.vmem [shape: f32[1,16], index: 10, kind: input, shape index: {}]   ;;  %s882_s11 = inlined_call_operand.hbm [shape: f32[1,2,16], index: 11, kind: output, shape index: {}]  }
   0x1   :  { %v45_v0 = vld [vmem:[%s873_s2 + $0x8] sm:$0xff]  ;;  %v44_v1 = vld [vmem:[%s873_s2] sm:$0xff]  ;;  %507 = vset.pattern.permute.xlu1 %v571_v2  ;;  %506 = vset.pattern.permute.xlu0 %v571_v2  ;;  %v46_v3 = vld [vmem:[%s873_s2 + $0x10] sm:$0xff] }
   0x2   :  { %vm49_vm0 = vcmp.eq.s32.totalorder %v45_v0, 0  ;;  %vm48_vm1 = vcmp.eq.s32.totalorder %v44_v1, 0  ;;  %508 = vset.pattern.permute.xlu2 %v571_v2  ;;  %vm50_vm2 = vcmp.eq.s32.totalorder %v46_v3, 0 }
   0x3   :  { %v77_v4 = vsel %vm49_vm0, 1, %v571_v2  ;;  %v76_v5 = vsel %vm48_vm1, 1, %v571_v2  ;;  %v78_v6 = vsel %vm50_vm2, 1, %v571_v2 }
   0x4   :  { %84 = vperm.xlu1 %507, %v77_v4   ;;  %81 = vperm.xlu0 %506, %v76_v5  }
   0x5   :  { %16 = vsyncpa [#allocation3], 0  ;;  %vm53_vm3 = vcmp.eq.s32.totalorder %v45_v0, 15  ;;  %vm52_vm4 = vcmp.eq.s32.totalorder %v44_v1, 15  ;;  %87 = vperm.xlu2 %508, %v78_v6   ;;  %vm54_vm5 = vcmp.eq.s32.totalorder %v46_v3, 15  ;;  %v47_v9 = vld [vmem:[%s873_s2 + $0x18] sm:$0xff]  ;;  %v60_v21 = vlaneseq }
   0x6   :  { %v105_v7 = vsel %vm53_vm3, 1, %v571_v2  ;;  %v104_v8 = vsel %vm52_vm4, 1, %v571_v2  ;;  %v106_v10 = vsel %vm54_vm5, 1, %v571_v2  ;;  %vm55_vm6 = vcmp.eq.s32.totalorder %v47_v9, 15  ;;  %v159_v13 = vld [vmem:[%s874_s3 + $0x18] sm:$0xff]  ;;  %v158_v15 = vld [vmem:[%s874_s3 + $0x10] sm:$0xff] }
   0x7   :  { %vm51_vm7 = vcmp.eq.s32.totalorder %v47_v9, 0  ;;  %v107_v11 = vsel %vm55_vm6, 1, %v571_v2  ;;  %v221_v14 = vld [vmem:[%s876_s5 + $0x18] sm:$0xff]  ;;  %189 = vmatpush.msra.mxu0 %v159_v13  ;;  %v220_v16 = vld [vmem:[%s876_s5 + $0x10] sm:$0xff]  ;;  %v157_v17 = vld [vmem:[%s874_s3 + $0x8] sm:$0xff]  ;;  %v669_v22 = vshrl.u32 %v60_v21, 7 }
   0x8   :  { %v79_v12 = vsel %vm51_vm7, 1, %v571_v2  ;;  %238 = vmatpush.msra.mxu1 %v221_v14  ;;  %v219_v18 = vld [vmem:[%s876_s5 + $0x8] sm:$0xff]  ;;  %v156_v19 = vld [vmem:[%s874_s3] sm:$0xff]  ;;  %v679_v24 = vld [vmem:[%s871_s0 + $0x18] sm:$0xff]  ;;  %vm164_vm15 = vcmask 261120  }
   0x9   :  { %190 = vmatpush.msra.mxu0 %v158_v15  ;;  %v218_v20 = vld [vmem:[%s876_s5] sm:$0xff]  ;;  %v40_v25 = vld [vmem:[%s871_s0 + $0x8] sm:$0xff]  ;;  %v59_v27 = vrot.slane %v679_v24, 7  ;;  %vm62_vm8 = vcmp.lt.s32.totalorder %v669_v22, 1  ;;  %v41_v31 = vld [vmem:[%s871_s0 + $0x10] sm:$0xff]  ;;  %vm71_vm10 = vcmp.lt.s32.totalorder %v669_v22, 7 }
   0xa   :  { %239 = vmatpush.msra.mxu1 %v220_v16  ;;  %v674_v23 = vld [vmem:[%s871_s0] sm:$0xff]  ;;  %v57_v30 = vrot.slane %v40_v25, 7  ;;  %v68_v33 = vrot.slane %v40_v25, 1  ;;  %v69_v37 = vrot.slane %v41_v31, 1  ;;  %v58_v42 = vrot.slane %v41_v31, 7 }
   0xb   :  { %191 = vmatpush.msra.mxu0 %v157_v17  ;;  %v56_v26 = vrot.slane %v674_v23, 7  ;;  %v67_v34 = vrot.slane %v674_v23, 1  ;;  %v70_v56 = vrot.slane %v679_v24, 1 }
   0xc   :  { %112 = vperm.xlu1 %507, %v105_v7   ;;  %109 = vperm.xlu0 %506, %v104_v8   ;;  %v73_v46 = vsel %vm71_vm10, %v68_v33, %v69_v37  ;;  %v64_v52 = vsel %vm62_vm8, %v57_v30, %v58_v42  ;;  %v63_v7 = vsel %vm62_vm8, %v58_v42, %v59_v27 }
   0xd   :  { %115 = vperm.xlu2 %508, %v106_v10   ;;  %240 = vmatpush.msra.mxu1 %v219_v18  ;;  %v66_v32 = vsel %vm62_vm8, %v59_v27, %v56_v26  ;;  %v65_v36 = vsel %vm62_vm8, %v56_v26, %v57_v30  ;;  %v74_v39 = vsel %vm71_vm10, %v67_v34, %v68_v33 }
   0xe   :  { %192 = vmatpush.msra.mxu0 %v156_v19  ;;  %v72_v63 = vsel %vm71_vm10, %v69_v37, %v70_v56  ;;  %v75_v14 = vsel %vm71_vm10, %v70_v56, %v67_v34 }
   0xf   :  { %241 = vmatpush.msra.mxu1 %v218_v20 }
  0x14   :  { %118 = vperm.xlu1 %507, %v107_v11   ;;  %90 = vperm.xlu0 %506, %v79_v12  }
  0x5f   :  { %v88_v35 = vpop.permute.xlu2 %87 }
  0x60   :  { %vm94_vm14 = vcmp.eq.s32.totalorder %v88_v35, 1 }
  0x61   :  { %v134_v61 = vsel %vm94_vm14, 0.0, %v64_v52  ;;  %v98_v4 = vsel %vm94_vm14, -inf, %v64_v52 }
  0x62   :  { %v138_v2 = vadd.f32 %v134_v61, %v41_v31  ;;  %v102_v8 = vmax.f32 %v98_v4, %v41_v31 }
  0x67   :  { %v116_v58 = vpop.permute.xlu2 %115 }
  0x68   :  { %vm122_vm0 = vcmp.eq.s32.totalorder %v116_v58, 1 }
  0x69   :  { %v142_v5 = vsel %vm122_vm0, 0.0, %v72_v63  ;;  %v126_v11 = vsel %vm122_vm0, -inf, %v72_v63 }
  0x6a   :  { %v146_v9 = vadd.f32 %v142_v5, %v138_v2  ;;  %v130_v15 = vmax.f32 %v102_v8, %v126_v11 }
  0x6c   :  { %v150_v16 = vmul.f32 0.33333334, %v146_v9 }
  0x6e   :  { %v730_v20 = vadd.f32 %v150_v16, %v130_v15 }
  0x76   :  { %v85_v28 = vpop.permute.xlu1 %84  ;;  %v82_v29 = vpop.permute.xlu0 %81 }
  0x77   :  { %vm92_vm9 = vcmp.eq.s32.totalorder %v82_v29, 1  ;;  %vm93_vm11 = vcmp.eq.s32.totalorder %v85_v28, 1 }
  0x78   :  { %v132_v38 = vsel %vm92_vm9, 0.0, %v66_v32  ;;  %v133_v40 = vsel %vm93_vm11, 0.0, %v65_v36  ;;  %v96_v41 = vsel %vm92_vm9, -inf, %v66_v32  ;;  %v97_v57 = vsel %vm93_vm11, -inf, %v65_v36  ;;  %v509_v36 = vld [vmem:[%s875_s4] ss:$0 sm:$0xff] }
  0x79   :  { %v136_v45 = vadd.f32 %v132_v38, %v674_v23  ;;  %v137_v49 = vadd.f32 %v133_v40, %v40_v25  ;;  %v100_v50 = vmax.f32 %v96_v41, %v674_v23  ;;  %v101_v62 = vmax.f32 %v97_v57, %v40_v25 }
  0x7e   :  { %v113_v43 = vpop.permute.xlu1 %112  ;;  %v110_v44 = vpop.permute.xlu0 %109 }
  0x7f   :  { %vm121_vm12 = vcmp.eq.s32.totalorder %v113_v43, 1  ;;  %vm120_vm13 = vcmp.eq.s32.totalorder %v110_v44, 1 }
  0x80   :  { %v124_v47 = vsel %vm120_vm13, -inf, %v74_v39  ;;  %v140_v48 = vsel %vm120_vm13, 0.0, %v74_v39  ;;  %v141_v53 = vsel %vm121_vm12, 0.0, %v73_v46  ;;  %v125_v0 = vsel %vm121_vm12, -inf, %v73_v46 }
  0x81   :  { %v144_v51 = vadd.f32 %v140_v48, %v136_v45  ;;  %v128_v54 = vmax.f32 %v100_v50, %v124_v47  ;;  %v145_v59 = vadd.f32 %v141_v53, %v137_v49  ;;  %v129_v6 = vmax.f32 %v101_v62, %v125_v0 }
  0x83   :  { %v148_v55 = vmul.f32 0.33333334, %v144_v51  ;;  %v149_v3 = vmul.f32 0.33333334, %v145_v59 }
  0x85   :  { %v708_v60 = vadd.f32 %v148_v55, %v128_v54  ;;  %v721_v10 = vadd.f32 %v149_v3, %v129_v6 }
  0x86   :  { %v91_v1 = vpop.permute.xlu0 %90  ;;  %v119_v12 = vpop.permute.xlu1 %118 }
  0x87   :  { %487 = vmatmul.msk.f32.vlgmr.msra.gmra.mxu0 %vm164_vm15, %v708_v60  ;;  %491 = vmatmul.msk.f32.vlgmr.msra.gmra.mxu1 %vm164_vm15, %v708_v60  ;;  %vm95_vm1 = vcmp.eq.s32.totalorder %v91_v1, 1  ;;  %vm123_vm2 = vcmp.eq.s32.totalorder %v119_v12, 1 }
  0x88   :  { %v135_v13 = vsel %vm95_vm1, 0.0, %v63_v7  ;;  %v143_v18 = vsel %vm123_vm2, 0.0, %v75_v14  ;;  %v99_v19 = vsel %vm95_vm1, -inf, %v63_v7  ;;  %v127_v25 = vsel %vm123_vm2, -inf, %v75_v14 }
  0x89   :  { %v139_v17 = vadd.f32 %v135_v13, %v679_v24  ;;  %v103_v23 = vmax.f32 %v99_v19, %v679_v24  ;;  %v510_v24 = vld [vmem:[%s877_s6] ss:$0 sm:$0xff] }
  0x8b   :  { %v147_v21 = vadd.f32 %v143_v18, %v139_v17  ;;  %v131_v26 = vmax.f32 %v103_v23, %v127_v25 }
  0x8d   :  { %v151_v22 = vmul.f32 0.33333334, %v147_v21  ;;  %v777_v21 = vld [vmem:[%s872_s1] sm:$0x3] }
  0x8f   :  { %488 = vmatmul.msk.f32.gmra.mxu0 %vm164_vm15, %v721_v10  ;;  %492 = vmatmul.msk.f32.gmra.mxu1 %vm164_vm15, %v721_v10  ;;  %v737_v27 = vadd.f32 %v151_v22, %v131_v26 }
  0x97   :  { %489 = vmatmul.msk.f32.gmra.mxu0 %vm164_vm15, %v730_v20  ;;  %493 = vmatmul.msk.f32.gmra.mxu1 %vm164_vm15, %v730_v20 }
  0x9f   :  { %490 = vmatmul.msk.f32.gmra.mxu0 %vm164_vm15, %v737_v27  ;;  %494 = vmatmul.msk.f32.gmra.mxu1 %vm164_vm15, %v737_v27 }
 0x104   :  { %v194_v28 = vpop.f32.mrf.mxu0  ;;  %v243_v29 = vpop.f32.mrf.mxu1 }
 0x105   :  { %v244_v30 = vadd.f32 %v510_v24, %v243_v29  ;;  %v195_v41 = vadd.f32 %v509_v36, %v194_v28 }
 0x107   :  { %v495_v33 = vmul.f32 -1.442695, %v244_v30 }
 0x109   :  { %511 = vpow2.f32 %v495_v33 }
 0x10c   :  { %v197_v31 = vpop.f32.mrf.mxu0  ;;  %v246_v32 = vpop.f32.mrf.mxu1 }
 0x10d   :  { %v247_v34 = vadd.f32 %v510_v24, %v246_v32  ;;  %v198_v45 = vadd.f32 %v509_v36, %v197_v31 }
 0x10f   :  { %v496_v35 = vmul.f32 -1.442695, %v247_v34  ;;  %v512_v40 = vpop.eup %511 }
 0x110   :  { %v749_v46 = vadd.f32 1.0, %v512_v40 }
 0x111   :  { %513 = vpow2.f32 %v496_v35 }
 0x112   :  { %vm276_vm3 = vweird.f32 %v749_v46 }
 0x114   :  { %v200_v37 = vpop.f32.mrf.mxu0  ;;  %v249_v38 = vpop.f32.mrf.mxu1 }
 0x115   :  { %v250_v39 = vadd.f32 %v510_v24, %v249_v38  ;;  %v201_v43 = vadd.f32 %v509_v36, %v200_v37 }
 0x117   :  { %v497_v42 = vmul.f32 -1.442695, %v250_v39  ;;  %v514_v44 = vpop.eup %513 }
 0x118   :  { %v751_v47 = vadd.f32 1.0, %v514_v44  ;;  %v282_v44 = vand.u32 2147483648, %v749_v46 }
 0x119   :  { %515 = vpow2.f32 %v497_v42 }
 0x11a   :  { %517 = vtanh.f32 %v195_v41  ;;  %vm291_vm9 = vweird.f32 %v751_v47  ;;  %v295_v34 = vand.u32 2147483647, %v751_v47  ;;  %v297_v35 = vand.u32 2147483648, %v751_v47 }
 0x11b   :  { %519 = vtanh.f32 %v201_v43  ;;  %v280_v43 = vand.u32 2147483647, %v749_v46 }
 0x11c   :  { %v203_v48 = vpop.f32.mrf.mxu0  ;;  %v252_v49 = vpop.f32.mrf.mxu1  ;;  %521 = vtanh.f32 %v198_v45  ;;  %v385_v45 = vld [vmem:[%s878_s7 + $0x28] sm:$0xff]  ;;  %vm296_vm2 = vcmp.eq.f32.partialorder %v295_v34, 8.507059e+37 }
 0x11d   :  { %v204_v50 = vadd.f32 %v509_v36, %v203_v48  ;;  %v253_v51 = vadd.f32 %v510_v24, %v252_v49  ;;  %523 = vrcp.f32 %v749_v46  ;;  %v387_v24 = vld [vmem:[%s878_s7 + $0x38] sm:$0xff]  ;;  %v386_v36 = vld [vmem:[%s878_s7 + $0x30] sm:$0xff] }
 0x11f   :  { %v516_v52 = vpop.eup %515  ;;  %525 = vtanh.f32 %v204_v50  ;;  %v498_v53 = vmul.f32 -1.442695, %v253_v51  ;;  %v298_v51 = vor.u32 1.1754944e-38, %v297_v35 }
 0x120   :  { %527 = vrcp.f32 %v751_v47  ;;  %v755_v54 = vadd.f32 1.0, %v516_v52  ;;  %v518_v55 = vpop.eup %517 }
 0x121   :  { %529 = vpow2.f32 %v498_v53  ;;  %v520_v56 = vpop.eup %519  ;;  %v210_v6 = vmul.f32 1.442695, %v518_v55  ;;  %v283_v55 = vor.u32 1.1754944e-38, %v282_v44 }
 0x122   :  { %531 = vrcp.f32 %v755_v54  ;;  %v522_v57 = vpop.eup %521  ;;  %v214_v61 = vmul.f32 1.442695, %v520_v56  ;;  %vm306_vm6 = vweird.f32 %v755_v54  ;;  %v310_v28 = vand.u32 2147483647, %v755_v54 }
 0x123   :  { %v758_v58 = vpop.eup %523  ;;  %v212_v2 = vmul.f32 1.442695, %v522_v57  ;;  %v312_v29 = vand.u32 2147483648, %v755_v54 }
 0x124   :  { %v272_v7 = vmul.f32 %v758_v58, %v749_v46  ;;  %vm277_vm10 = vweird.f32 %v758_v58  ;;  %vm311_vm0 = vcmp.eq.f32.partialorder %v310_v28, 8.507059e+37  ;;  %v384_v46 = vld [vmem:[%s878_s7 + $0x20] sm:$0xff] }
 0x125   :  { %v526_v59 = vpop.eup %525  ;;  %v313_v42 = vor.u32 1.1754944e-38, %v312_v29  ;;  %vm278_vm1 = vmor %vm276_vm3, %vm277_vm10  ;;  %vm393_vm3 = vcmask 523264  }
 0x126   :  { %v760_v62 = vpop.eup %527  ;;  %v216_v63 = vmul.f32 1.442695, %v526_v59  ;;  %v273_v12 = vsub.f32 1.0, %v272_v7 }
 0x127   :  { %v530_v0 = vpop.eup %529  ;;  %v287_v5 = vmul.f32 %v760_v62, %v751_v47  ;;  %vm292_vm5 = vweird.f32 %v760_v62 }
 0x128   :  { %v762_v1 = vpop.eup %531  ;;  %533 = vpow2.f32 %v216_v63  ;;  %v270_v3 = vadd.f32 1.0, %v530_v0  ;;  %v274_v19 = vmul.f32 %v758_v58, %v273_v12  ;;  %vm807_vm12 = vmor %vm291_vm9, %vm292_vm5  ;;  %vm469_vm5 = vcmask 123904  }
 0x129   :  { %535 = vpow2.f32 %v214_v61  ;;  %v302_v4 = vmul.f32 %v762_v1, %v755_v54  ;;  %v288_v9 = vsub.f32 1.0, %v287_v5  ;;  %vm307_vm4 = vweird.f32 %v762_v1  ;;  %v388_v5 = vld [vmem:[%s879_s8] sm:$0x1]  ;;  %s478_s8 = sshll.u32 %s882_s11, 4  ;;  %s479_s8 = int_to_ptr.hbm [resolvable:$true] %s478_s8 }
 0x12a   :  { %537 = vrcp.f32 %v270_v3  ;;  %v327_v26 = vand.u32 2147483648, %v270_v3  ;;  %v325_v31 = vand.u32 2147483647, %v270_v3  ;;  %vm791_vm8 = vmor %vm306_vm6, %vm307_vm4  ;;  %vm321_vm11 = vweird.f32 %v270_v3 }
 0x12b   :  { %v303_v8 = vsub.f32 1.0, %v302_v4  ;;  %539 = vpow2.f32 %v212_v2  ;;  %v289_v17 = vmul.f32 %v760_v62, %v288_v9  ;;  %v275_v40 = vadd.f32 %v758_v58, %v274_v19  ;;  %v437_v4 = vld [vmem:[%s880_s9] sm:$0xff] }
 0x12c   :  { %541 = vpow2.f32 %v210_v6  ;;  %v328_v41 = vor.u32 1.1754944e-38, %v327_v26  ;;  %vm326_vm14 = vcmp.eq.f32.partialorder %v325_v31, 8.507059e+37  ;;  %vm281_vm4 = vcmp.eq.f32.partialorder %v280_v43, 8.507059e+37 }
 0x12d   :  { %v304_v14 = vmul.f32 %v762_v1, %v303_v8  ;;  %v290_v32 = vadd.f32 %v760_v62, %v289_v17  ;;  %v279_v53 = vsel %vm278_vm1, %v758_v58, %v275_v40  ;;  %v383_v58 = vld [vmem:[%s878_s7 + $0x18] sm:$0xff]  ;;  %v389_v6 = vmul.f32 16.0, %v388_v5 }
 0x12e   :  { %v534_v11 = vpop.eup %533  ;;  %v284_v57 = vsel %vm281_vm4, %v283_v55, %v279_v53 }
 0x12f   :  { %v536_v13 = vpop.eup %535  ;;  %346 = vmatpush.msra.mxu2 %v534_v11  ;;  %v305_v22 = vadd.f32 %v762_v1, %v304_v14  ;;  %v294_v48 = vsel %vm807_vm12, %v760_v62, %v290_v32  ;;  %v439_v62 = vld [vmem:[%s880_s9 + $0x10] sm:$0xff]  ;;  %v391_v7 = vperm.slane %v389_v6, 0 }
 0x130   :  { %v538_v15 = vpop.eup %537  ;;  %v299_v54 = vsel %vm296_vm2, %v298_v51, %v294_v48 }
 0x131   :  { %347 = vmatpush.msra.mxu2 %v536_v13  ;;  %v317_v16 = vmul.f32 %v538_v15, %v270_v3  ;;  %v540_v18 = vpop.eup %539  ;;  %vm322_vm7 = vweird.f32 %v538_v15  ;;  %v309_v38 = vsel %vm791_vm8, %v762_v1, %v305_v22  ;;  %v438_v3 = vld [vmem:[%s880_s9 + $0x8] sm:$0xff] }
 0x132   :  { %v542_v25 = vpop.eup %541  ;;  %vm323_vm13 = vmor %vm321_vm11, %vm322_vm7  ;;  %v314_v50 = vsel %vm311_vm0, %v313_v42, %v309_v38  ;;  %v355_v59 = vmul.f32 %v540_v18, %v299_v54 }
 0x133   :  { %348 = vmatpush.msra.mxu2 %v540_v18  ;;  %v318_v23 = vsub.f32 1.0, %v317_v16  ;;  %v356_v56 = vmul.f32 %v536_v13, %v314_v50  ;;  %v354_v61 = vmul.f32 %v542_v25, %v284_v57  ;;  %v441_v13 = vld [vmem:[%s881_s10] sm:$0x1] }
 0x134   :  { %v442_v14 = vmul.f32 16.0, %v441_v13 }
 0x135   :  { %349 = vmatpush.msra.mxu2 %v542_v25  ;;  %v319_v30 = vmul.f32 %v538_v15, %v318_v23 }
 0x136   :  { %499 = vmatmul.msk.f32.vlgmr.msra.gmra.mxu2 %vm164_vm15, %v777_v21 }
 0x137   :  { %v320_v37 = vadd.f32 %v538_v15, %v319_v30  ;;  %405 = vmatpush.msrb.mxu2 %v387_v24 }
 0x139   :  { %v324_v47 = vsel %vm323_vm13, %v538_v15, %v320_v37  ;;  %406 = vmatpush.msrb.mxu2 %v386_v36  ;;  %v444_v15 = vperm.slane %v442_v14, 0 }
 0x13a   :  { %v329_v49 = vsel %vm326_vm14, %v328_v41, %v324_v47 }
 0x13b   :  { %v357_v52 = vmul.f32 %v534_v11, %v329_v49  ;;  %407 = vmatpush.msrb.mxu2 %v385_v45 }
 0x13d   :  { %370 = vmatpush.msra.mxu3 %v357_v52  ;;  %408 = vmatpush.msrb.mxu2 %v384_v46 }
 0x13f   :  { %371 = vmatpush.msra.mxu3 %v356_v56  ;;  %409 = vmatpush.msrb.mxu2 %v383_v58 }
 0x141   :  { %372 = vmatpush.msra.mxu3 %v355_v59 }
 0x143   :  { %373 = vmatpush.msra.mxu3 %v354_v61 }
 0x144   :  { %500 = vmatmul.msk.f32.vlgmr.msra.gmra.mxu3 %vm164_vm15, %v777_v21 }
 0x145   :  { %429 = vmatpush.msrb.mxu3 %v737_v27  ;;  %v440_v27 = vld [vmem:[%s880_s9 + $0x18] sm:$0xff]  ;;  %s572_s9 = smov [#allocation2]  }
 0x146   :  { %s476_s30 = sshll.u32 %s572_s9, 4  ;;  %s477_s30 = int_to_ptr.vmem [resolvable:$true] %s476_s30 }
 0x147   :  { %430 = vmatpush.msrb.mxu3 %v730_v20  ;;  %v382_v20 = vld [vmem:[%s878_s7 + $0x10] sm:$0xff] }
 0x148   :  { %410 = vmatpush.msrb.mxu2 %v382_v20 }
 0x149   :  { %431 = vmatpush.msrb.mxu3 %v721_v10  ;;  %v380_v10 = vld [vmem:[%s878_s7] sm:$0xff] }
 0x14b   :  { %432 = vmatpush.msrb.mxu3 %v708_v60  ;;  %v381_v60 = vld [vmem:[%s878_s7 + $0x8] sm:$0xff] }
 0x14c   :  { %502 = vmatmul.msk.f32.vlgmr.msrb.gmra.mxu3 %vm164_vm15, %v777_v21  ;;  %411 = vmatpush.msrb.mxu2 %v381_v60 }
 0x14d   :  { %461 = vmatpush.msra.mxu3 %v440_v27 }
 0x14e   :  { %412 = vmatpush.msrb.mxu2 %v380_v10 }
 0x14f   :  { %462 = vmatpush.msra.mxu3 %v439_v62 }
 0x151   :  { %463 = vmatpush.msra.mxu3 %v438_v3 }
 0x153   :  { %464 = vmatpush.msra.mxu3 %v437_v4 }
 0x1b9   :  { %v351_v63 = vpop.f32.mrf.mxu2 }
 0x1ba   :  { %543 = vrcp.f32 %v351_v63 }
 0x1c0   :  { %v544_v0 = vpop.eup %543 }
 0x1c7   :  { %v375_v1 = vpop.f32.mrf.mxu3 }
 0x1c8   :  { %v379_v2 = vmul.f32 %v544_v0, %v375_v1 }
 0x1ca   :  { %501 = vmatmul.msk.f32.vlgmr.msrb.gmra.mxu2 %vm393_vm3, %v379_v2 }
 0x1cf   :  { %v434_v9 = vpop.f32.mrf.mxu3 }
 0x24d   :  { %v414_v8 = vpop.f32.mrf.mxu2 }
 0x24e   :  { %v415_v11 = vadd.f32 %v414_v8, %v391_v7 }
 0x250   :  { %v435_v12 = vadd.f32 %v434_v9, %v415_v11 }
 0x252   :  { %503 = vmatmul.msk.f32.vlgmr.msra.gmra.mxu3 %vm164_vm15, %v435_v12 }
 0x2d5   :  { %v466_v16 = vpop.f32.mrf.mxu3 }
 0x2d6   :  { %v467_v17 = vadd.f32 %v466_v16, %v444_v15 }
 0x2d8   :  { %470 = vst.msk [vmem:[#allocation2] sm:$0x3] %vm469_vm5, %v467_v17 }
 0x2d9   :  { %481 = dma.vmem_to_hbm [thread:$0]  %s477_s30, 32, %s479_s8, [#allocation3]  }
 0x2da   :  { %569 = dma.done.wait [#allocation3], 32  }
 0x2db   :  { %570 = vsyncadd [#allocation3], 4294967264 }
 0x2dc   :  { %486 = vsyncpa [#allocation3], 1 }

</bundles_post_ra>
